<compile_context>
chip_gen: v7x
topology: tpu7x:2x2x1
jax: 0.10.0
libtpu: 0.0.40
codegen_flags: <defaults>
</compile_context>

<pallas_src>
import functools

import jax
import jax.numpy as jnp
from jax.experimental import pallas as pl
from jax.experimental.pallas import tpu as pltpu


def _attention_kernel(x_ref, wqkv_ref, wproj_ref, bproj_ref, o_ref, acc_ref,
                      *, scale, n_actual):
    """One (batch, head) grid step: per-head attention + accumulated projection."""
    h = pl.program_id(1)

    x = x_ref[0]                      # (Np, C)  bf16
    wq = wqkv_ref[0, 0]               # (C, Dh)  bf16
    wk = wqkv_ref[1, 0]
    wv = wqkv_ref[2, 0]

    # qkv projection for this head (bf16 operands, fp32 accumulation on the MXU).
    q = jnp.dot(x, wq, preferred_element_type=jnp.float32) * scale   # (Np, Dh)
    k = jnp.dot(x, wk, preferred_element_type=jnp.float32)           # (Np, Dh)
    v = jnp.dot(x, wv, preferred_element_type=jnp.float32)           # (Np, Dh)

    # s = q @ k^T with the transpose folded into the contraction dims (no vxpose).
    s = jax.lax.dot_general(
        q.astype(jnp.bfloat16), k.astype(jnp.bfloat16),
        (((1,), (1,)), ((), ())),
        preferred_element_type=jnp.float32)                          # (Np, Np)

    n_pad = s.shape[-1]
    if n_actual < n_pad:  # static: only emitted when the wrapper padded N
        col = jax.lax.broadcasted_iota(jnp.int32, s.shape, 1)
        s = jnp.where(col < n_actual, s, -1e30)

    # Numerically-stable softmax in fp32; divide goes to the EUP via approx recip.
    s = s - jnp.max(s, axis=-1, keepdims=True)
    p = jnp.exp(s)
    denom = jnp.sum(p, axis=-1, keepdims=True)
    p = p * pl.reciprocal(denom, approx=True)
    # attn_drop(p) with p=0.0 -> identity

    head_out = jnp.dot(p.astype(jnp.bfloat16), v.astype(jnp.bfloat16),
                       preferred_element_type=jnp.float32)           # (Np, Dh)

    # Per-head slice of the output projection: (Np, Dh) @ (Dh, C) -> (Np, C)
    proj_h = jnp.dot(head_out.astype(jnp.bfloat16), wproj_ref[0],
                     preferred_element_type=jnp.float32)

    @pl.when(h == 0)
    def _init():
        acc_ref[...] = jnp.broadcast_to(
            bproj_ref[...].astype(jnp.float32), acc_ref.shape)

    acc_ref[...] += proj_h

    @pl.when(h == pl.num_programs(1) - 1)
    def _finalize():
        # proj_drop with p=0.0 -> identity
        o_ref[0] = acc_ref[...].astype(o_ref.dtype)


def attention_forward(x, w_qkv, w_proj, b_proj, *, num_heads):
    """x: (B, N, C); w_qkv: (C, 3C); w_proj: (C, C); b_proj: (1, C)."""
    B, N, C = x.shape
    head_dim = C // num_heads
    scale = head_dim ** (-0.5)

    # Sublane-align the sequence dimension (padded keys are masked in-kernel).
    n_pad = ((N + 7) // 8) * 8
    x_in = x if n_pad == N else jnp.pad(x, ((0, 0), (0, n_pad - N), (0, 0)))

    # bf16 MXU operands; weights re-laid-out per head so the kernel never lane-slices.
    x_bf = x_in.astype(jnp.bfloat16)
    wqkv_heads = (w_qkv.reshape(C, 3, num_heads, head_dim)
                  .transpose(1, 2, 0, 3)
                  .astype(jnp.bfloat16))                      # (3, H, C, Dh)
    wproj_heads = (w_proj.reshape(num_heads, head_dim, C)
                   .astype(jnp.bfloat16))                     # (H, Dh, C)
    b_proj32 = b_proj.astype(jnp.float32).reshape(1, C)

    kernel = functools.partial(_attention_kernel, scale=scale, n_actual=N)

    out = pl.pallas_call(
        kernel,
        out_shape=jax.ShapeDtypeStruct((B, n_pad, C), x.dtype),
        grid_spec=pltpu.PrefetchScalarGridSpec(
            num_scalar_prefetch=0,
            grid=(B, num_heads),
            in_specs=[
                pl.BlockSpec((1, n_pad, C), lambda b, h: (b, 0, 0)),          # x
                pl.BlockSpec((3, 1, C, head_dim), lambda b, h: (0, h, 0, 0)),  # qkv weights (per head)
                pl.BlockSpec((1, head_dim, C), lambda b, h: (h, 0, 0)),        # proj weights (per head)
                pl.BlockSpec((1, C), lambda b, h: (0, 0)),                     # proj bias
            ],
            out_specs=pl.BlockSpec((1, n_pad, C), lambda b, h: (b, 0, 0)),
            scratch_shapes=[pltpu.VMEM((n_pad, C), jnp.float32)],              # fp32 accumulator
        ),
        compiler_params=pltpu.CompilerParams(
            dimension_semantics=("parallel", "arbitrary"),
            vmem_limit_bytes=64 * 1024 * 1024,
        ),
    )(x_bf, wqkv_heads, wproj_heads, b_proj32)

    if n_pad != N:
        out = out[:, :N, :]
    return out


def _reference(x, w_qkv, w_proj, b_proj, *, num_heads):
    """Pure-JAX (fp32) reference matching the PyTorch forward exactly."""
    B, N, C = x.shape
    head_dim = C // num_heads
    scale = head_dim ** (-0.5)

    qkv = x @ w_qkv                                       # (B, N, 3C)
    qkv = qkv.reshape(B, N, 3, num_heads, head_dim)
    qkv = jnp.transpose(qkv, (2, 0, 3, 1, 4))             # (3, B, H, N, Dh)
    q, k, v = qkv[0], qkv[1], qkv[2]

    attn = jnp.einsum("bhnd,bhmd->bhnm", q, k) * scale
    attn = jax.nn.softmax(attn, axis=-1)
    out = jnp.einsum("bhnm,bhmd->bhnd", attn, v)          # (B, H, N, Dh)
    out = jnp.transpose(out, (0, 2, 1, 3)).reshape(B, N, C)
    return out @ w_proj + b_proj[0]


if __name__ == "__main__":
    # Small shapes consistent with the module: dim=C must be divisible by heads.
    B, N, C = 2, 8, 32
    num_heads = 8

    key = jax.random.PRNGKey(0)
    kx, kq, kp, kb = jax.random.split(key, 4)

    x = jax.random.normal(kx, (B, N, C), dtype=jnp.float32)

    # Deterministic synthetic parameters (qkv_bias=False per module default).
    w_qkv = jax.random.normal(kq, (C, 3 * C), dtype=jnp.float32) * 0.05
    w_proj = jax.random.normal(kp, (C, C), dtype=jnp.float32) * 0.05
    b_proj = jax.random.normal(kb, (1, C), dtype=jnp.float32) * 0.05

    out = attention_forward(x, w_qkv, w_proj, b_proj, num_heads=num_heads)
    out = jax.block_until_ready(out)

    ref = _reference(x, w_qkv, w_proj, b_proj, num_heads=num_heads)
    assert out.shape == (B, N, C)
    # bf16 MXU operands + approx reciprocal -> compare with a bf16-appropriate tolerance.
    assert jnp.allclose(out, ref, atol=2e-2, rtol=2e-2), "Pallas kernel mismatch vs reference"

    print("KERNEL_OK")
</pallas_src>

<mosaic_0001>
module attributes {stable_mosaic.version = 11 : i64} {
  func.func @_attention_kernel(%arg0: i32, %arg1: i32, %arg2: memref<1x8x32xbf16, #tpu.memory_space<vmem>>, %arg3: memref<3x1x32x4xbf16, #tpu.memory_space<vmem>>, %arg4: memref<1x4x32xbf16, #tpu.memory_space<vmem>>, %arg5: memref<1x32xf32, #tpu.memory_space<vmem>>, %arg6: memref<1x8x32xf32, #tpu.memory_space<vmem>>, %arg7: memref<8x32xf32, #tpu.memory_space<vmem>>) attributes {dimension_semantics = [#tpu.dimension_semantics<parallel>, #tpu.dimension_semantics<arbitrary>], iteration_bounds = array<i64: 2, 8>, scalar_prefetch = 0 : i64, scratch_operands = 1 : i64, tpu.core_type = #tpu.core_type<tc>, window_params = [{transform_indices = @transform_0, window_bounds = array<i64: 1, 8, 32>}, {transform_indices = @transform_1, window_bounds = array<i64: 3, 1, 32, 4>}, {transform_indices = @transform_2, window_bounds = array<i64: 1, 4, 32>}, {pipeline_mode = #tpu.pipeline_mode<synchronous>, transform_indices = @transform_3, window_bounds = array<i64: 1, 32>}, {transform_indices = @transform_4, window_bounds = array<i64: 1, 8, 32>}]} {
    %c0 = arith.constant 0 : index
    %c0_0 = arith.constant 0 : index
    %c0_1 = arith.constant 0 : index
    %0 = vector.load %arg2[%c0, %c0_0, %c0_1] : memref<1x8x32xbf16, #tpu.memory_space<vmem>>, vector<1x8x32xbf16>
    %1 = vector.shape_cast %0 : vector<1x8x32xbf16> to vector<8x32xbf16>
    %c0_2 = arith.constant 0 : index
    %c0_3 = arith.constant 0 : index
    %c0_4 = arith.constant 0 : index
    %c0_5 = arith.constant 0 : index
    %2 = vector.load %arg3[%c0_2, %c0_3, %c0_4, %c0_5] : memref<3x1x32x4xbf16, #tpu.memory_space<vmem>>, vector<1x1x32x4xbf16>
    %3 = vector.shape_cast %2 : vector<1x1x32x4xbf16> to vector<32x4xbf16>
    %c1 = arith.constant 1 : index
    %c0_6 = arith.constant 0 : index
    %c0_7 = arith.constant 0 : index
    %c0_8 = arith.constant 0 : index
    %4 = vector.load %arg3[%c1, %c0_6, %c0_7, %c0_8] : memref<3x1x32x4xbf16, #tpu.memory_space<vmem>>, vector<1x1x32x4xbf16>
    %5 = vector.shape_cast %4 : vector<1x1x32x4xbf16> to vector<32x4xbf16>
    %c2 = arith.constant 2 : index
    %c0_9 = arith.constant 0 : index
    %c0_10 = arith.constant 0 : index
    %c0_11 = arith.constant 0 : index
    %6 = vector.load %arg3[%c2, %c0_9, %c0_10, %c0_11] : memref<3x1x32x4xbf16, #tpu.memory_space<vmem>>, vector<1x1x32x4xbf16>
    %7 = vector.shape_cast %6 : vector<1x1x32x4xbf16> to vector<32x4xbf16>
    %cst = arith.constant dense<0.000000e+00> : vector<8x4xf32>
    %8 = tpu.matmul %1, %3, %cst {dimension_numbers = #tpu.dot_dimension_numbers<[1], [0], [0], [1], [0, 0, 1, 1], [], []>} : vector<8x32xbf16>, vector<32x4xbf16>, vector<8x4xf32> -> vector<8x4xf32>
    %cst_12 = arith.constant 5.000000e-01 : f32
    %9 = vector.broadcast %cst_12 : f32 to vector<8x4xf32>
    %10 = arith.mulf %8, %9 : vector<8x4xf32>
    %cst_13 = arith.constant dense<0.000000e+00> : vector<8x4xf32>
    %11 = tpu.matmul %1, %5, %cst_13 {dimension_numbers = #tpu.dot_dimension_numbers<[1], [0], [0], [1], [0, 0, 1, 1], [], []>} : vector<8x32xbf16>, vector<32x4xbf16>, vector<8x4xf32> -> vector<8x4xf32>
    %cst_14 = arith.constant dense<0.000000e+00> : vector<8x4xf32>
    %12 = tpu.matmul %1, %7, %cst_14 {dimension_numbers = #tpu.dot_dimension_numbers<[1], [0], [0], [1], [0, 0, 1, 1], [], []>} : vector<8x32xbf16>, vector<32x4xbf16>, vector<8x4xf32> -> vector<8x4xf32>
    %13 = arith.truncf %10 : vector<8x4xf32> to vector<8x4xbf16>
    %14 = arith.truncf %11 : vector<8x4xf32> to vector<8x4xbf16>
    %cst_15 = arith.constant dense<0.000000e+00> : vector<8x8xf32>
    %15 = tpu.matmul %13, %14, %cst_15 {dimension_numbers = #tpu.dot_dimension_numbers<[1], [1], [0], [0], [0, 0, 1, 0], [], []>} : vector<8x4xbf16>, vector<8x4xbf16>, vector<8x8xf32> -> vector<8x8xf32>
    %cst_16 = arith.constant dense<0xFF800000> : vector<8xf32>
    %16 = vector.multi_reduction <maximumf>, %15, %cst_16 [1] : vector<8x8xf32> to vector<8xf32>
    %17 = vector.shape_cast %16 : vector<8xf32> to vector<8x1xf32>
    %18 = vector.broadcast %17 : vector<8x1xf32> to vector<8x8xf32>
    %19 = arith.subf %15, %18 : vector<8x8xf32>
    %20 = math.exp %19 : vector<8x8xf32>
    %cst_17 = arith.constant dense<0.000000e+00> : vector<8xf32>
    %21 = vector.multi_reduction <add>, %20, %cst_17 [1] : vector<8x8xf32> to vector<8xf32>
    %22 = vector.shape_cast %21 : vector<8xf32> to vector<8x1xf32>
    %23 = tpu.reciprocal %22 {approx = true} : vector<8x1xf32> -> vector<8x1xf32>
    %24 = vector.broadcast %23 : vector<8x1xf32> to vector<8x8xf32>
    %25 = arith.mulf %20, %24 : vector<8x8xf32>
    %26 = arith.truncf %25 : vector<8x8xf32> to vector<8x8xbf16>
    %27 = arith.truncf %12 : vector<8x4xf32> to vector<8x4xbf16>
    %cst_18 = arith.constant dense<0.000000e+00> : vector<8x4xf32>
    %28 = tpu.matmul %26, %27, %cst_18 {dimension_numbers = #tpu.dot_dimension_numbers<[1], [0], [0], [1], [0, 0, 1, 1], [], []>} : vector<8x8xbf16>, vector<8x4xbf16>, vector<8x4xf32> -> vector<8x4xf32>
    %29 = arith.truncf %28 : vector<8x4xf32> to vector<8x4xbf16>
    %c0_19 = arith.constant 0 : index
    %c0_20 = arith.constant 0 : index
    %c0_21 = arith.constant 0 : index
    %30 = vector.load %arg4[%c0_19, %c0_20, %c0_21] : memref<1x4x32xbf16, #tpu.memory_space<vmem>>, vector<1x4x32xbf16>
    %31 = vector.shape_cast %30 : vector<1x4x32xbf16> to vector<4x32xbf16>
    %cst_22 = arith.constant dense<0.000000e+00> : vector<8x32xf32>
    %32 = tpu.matmul %29, %31, %cst_22 {dimension_numbers = #tpu.dot_dimension_numbers<[1], [0], [0], [1], [0, 0, 1, 1], [], []>} : vector<8x4xbf16>, vector<4x32xbf16>, vector<8x32xf32> -> vector<8x32xf32>
    %c0_i32 = arith.constant 0 : i32
    %33 = arith.cmpi eq, %arg1, %c0_i32 : i32
    %34 = arith.extui %33 : i1 to i32
    %c0_i32_23 = arith.constant 0 : i32
    %35 = arith.cmpi ne, %34, %c0_i32_23 : i32
    scf.if %35 {
      %c0_29 = arith.constant 0 : index
      %c0_30 = arith.constant 0 : index
      %42 = vector.load %arg5[%c0_29, %c0_30] : memref<1x32xf32, #tpu.memory_space<vmem>>, vector<1x32xf32>
      %43 = vector.shape_cast %42 : vector<1x32xf32> to vector<1x32xf32>
      %44 = vector.broadcast %43 : vector<1x32xf32> to vector<8x32xf32>
      %c0_31 = arith.constant 0 : index
      %c0_32 = arith.constant 0 : index
      %45 = vector.load %arg7[%c0_31, %c0_32] : memref<8x32xf32, #tpu.memory_space<vmem>>, vector<8x32xf32>
      tpu.vector_store %arg7[%c0_31, %c0_32], %44 {strides = array<i32>} : memref<8x32xf32, #tpu.memory_space<vmem>>, vector<8x32xf32>,
    } else {
    }
    %c0_24 = arith.constant 0 : index
    %c0_25 = arith.constant 0 : index
    %36 = vector.load %arg7[%c0_24, %c0_25] : memref<8x32xf32, #tpu.memory_space<vmem>>, vector<8x32xf32>
    %37 = arith.addf %36, %32 : vector<8x32xf32>
    %c0_26 = arith.constant 0 : index
    %c0_27 = arith.constant 0 : index
    %38 = vector.load %arg7[%c0_26, %c0_27] : memref<8x32xf32, #tpu.memory_space<vmem>>, vector<8x32xf32>
    tpu.vector_store %arg7[%c0_26, %c0_27], %37 {strides = array<i32>} : memref<8x32xf32, #tpu.memory_space<vmem>>, vector<8x32xf32>,
    %c7_i32 = arith.constant 7 : i32
    %39 = arith.cmpi eq, %arg1, %c7_i32 : i32
    %40 = arith.extui %39 : i1 to i32
    %c0_i32_28 = arith.constant 0 : i32
    %41 = arith.cmpi ne, %40, %c0_i32_28 : i32
    scf.if %41 {
      %c0_29 = arith.constant 0 : index
      %c0_30 = arith.constant 0 : index
      %42 = vector.load %arg7[%c0_29, %c0_30] : memref<8x32xf32, #tpu.memory_space<vmem>>, vector<8x32xf32>
      %c0_31 = arith.constant 0 : index
      %c0_32 = arith.constant 0 : index
      %c0_33 = arith.constant 0 : index
      %43 = vector.load %arg6[%c0_31, %c0_32, %c0_33] : memref<1x8x32xf32, #tpu.memory_space<vmem>>, vector<1x8x32xf32>
      %44 = vector.shape_cast %43 : vector<1x8x32xf32> to vector<8x32xf32>
      %45 = vector.shape_cast %42 : vector<8x32xf32> to vector<1x8x32xf32>
      tpu.vector_store %arg6[%c0_31, %c0_32, %c0_33], %45 {strides = array<i32>} : memref<1x8x32xf32, #tpu.memory_space<vmem>>, vector<1x8x32xf32>,
    } else {
    }
    return
  }
  func.func @transform_0(%arg0: i32, %arg1: i32) -> (i32, i32, i32) {
    %c0_i32 = arith.constant 0 : i32
    %c0_i32_0 = arith.constant 0 : i32
    %c0_i32_1 = arith.constant 0 : i32
    return %arg0, %c0_i32, %c0_i32_0 : i32, i32, i32
  }
  func.func @transform_1(%arg0: i32, %arg1: i32) -> (i32, i32, i32, i32) {
    %c0_i32 = arith.constant 0 : i32
    %c0_i32_0 = arith.constant 0 : i32
    %c0_i32_1 = arith.constant 0 : i32
    %c0_i32_2 = arith.constant 0 : i32
    return %c0_i32, %arg1, %c0_i32_0, %c0_i32_1 : i32, i32, i32, i32
  }
  func.func @transform_2(%arg0: i32, %arg1: i32) -> (i32, i32, i32) {
    %c0_i32 = arith.constant 0 : i32
    %c0_i32_0 = arith.constant 0 : i32
    %c0_i32_1 = arith.constant 0 : i32
    return %arg1, %c0_i32, %c0_i32_0 : i32, i32, i32
  }
  func.func @transform_3(%arg0: i32, %arg1: i32) -> (i32, i32) {
    %c0_i32 = arith.constant 0 : i32
    %c0_i32_0 = arith.constant 0 : i32
    %c0_i32_1 = arith.constant 0 : i32
    return %c0_i32, %c0_i32_0 : i32, i32
  }
  func.func @transform_4(%arg0: i32, %arg1: i32) -> (i32, i32, i32) {
    %c0_i32 = arith.constant 0 : i32
    %c0_i32_0 = arith.constant 0 : i32
    %c0_i32_1 = arith.constant 0 : i32
    return %arg0, %c0_i32, %c0_i32_0 : i32, i32, i32
  }
}

</mosaic_0001>

<bundles_post_ra>
// kernel: tpu_custom_call.1
= control target key start
LH: loop header
LB: loop body
LE: loop exit
PB: predicated region body
PF: predicated region fallthrough
CT: control target
= control target key end

     0   :  { %s1690_s0 = inlined_call_operand.hbm [shape: bf16[2,8,32], index: 0, kind: input, shape index: {}]   ;;  %s1691_s1 = inlined_call_operand.hbm [shape: bf16[3,8,32,4], index: 1, kind: input, shape index: {}]   ;;  %s1692_s2 = inlined_call_operand.hbm [shape: bf16[8,4,32], index: 2, kind: input, shape index: {}]   ;;  %s1693_s3 = inlined_call_operand.hbm [shape: f32[1,32], index: 3, kind: input, shape index: {}]   ;;  %s1694_s4 = inlined_call_operand.hbm [shape: f32[2,8,32], index: 4, kind: output, shape index: {}]  }
   0x1   :  { %1710 = sst [smem:[#allocation27_spill]] %s1690_s0 }
   0x2   :  { %1711 = sst [smem:[#allocation28_spill]] %s1691_s1 }
   0x3   :  { %1712 = sst [smem:[#allocation29_spill]] %s1693_s3 }
   0x4   :  { %9 = vsyncpa [#allocation4], 0 }
   0x5   :  { %11 = vsyncpa [#allocation4 + $0x1], 0 }
   0x6   :  { %12 = vsyncpa [#allocation7], 0 }
   0x7   :  { %14 = vsyncpa [#allocation7 + $0x1], 0 }
   0x8   :  { %15 = vsyncpa [#allocation10], 0 }
   0x9   :  { %16 = vsyncpa [#allocation5], 0 }
   0xa   :  { %18 = vsyncpa [#allocation5 + $0x1], 0  ;;  %s1335_s15 = smov 0   ;;  %s1337_s16 = smov 0  }
   0xb   :  { %s1339_s17 = smov 0   ;;  %s1341_s18 = smov 0  }
   0xc   :  { %s1343_s19 = smov 0   ;;  %s1345_s20 = smov 0  }
   0xd   :  { %s1347_s21 = smov 0   ;;  %s1349_s22 = smov 0  }
   0xe   :  { %s1351_s23 = smov 0   ;;  %s1353_s24 = smov 0  }
   0xf   :  { %s1355_s25 = smov 0  }
  0x10 LB: > { %1713 = sst [smem:[#allocation19_spill]] %s1269_s18  ;;  %s1391_s26 = sadd.s32 4294967295, %s1297_s25   ;;  %s1297_s25 = sphi %s1355_s25, %s24_s25   ;;  %s1293_s24 = sphi %s1353_s24, %s1750_s24   ;;  %s1289_s23 = sphi %s1351_s23, %s1757_s23   ;;  %s1285_s22 = sphi %s1349_s22, %s1748_s22   ;;  %s1281_s21 = sphi %s1347_s21, %s1756_s21   ;;  %s1277_s20 = sphi %s1345_s20, %s1747_s20   ;;  %s1273_s19 = sphi %s1343_s19, %s1755_s19   ;;  %s1269_s18 = sphi %s1341_s18, %s1754_s18   ;;  %s1265_s17 = sphi %s1339_s17, %s1753_s17   ;;  %s1261_s16 = sphi %s1337_s16, %s1752_s16   ;;  %s1257_s15 = sphi %s1335_s15, %s1751_s15  }
  0x11   : > { %1714 = sst [smem:[#allocation20_spill]] %s1277_s20  ;;  %s843_s27 = sadd.s32 4294967294, %s1297_s25  }
  0x12   : > { %1715 = sst [smem:[#allocation21_spill]] %s1293_s24  ;;  %s33_s28 = sadd.s32 1, %s1289_s23 }
  0x13   : > { %s36_s29 = sadd.s32 1, %s1293_s24  ;;  %p34_p0 = scmp.ge.s32.totalorder %s33_s28, 8 }
  0x14   : > { %s43_s30 = sadd.s32 1, %s1277_s20  ;;  %p1696_p1 = scmp.ne.s32.totalorder %s1277_s20, %s1273_s19 }
  0x15   : > { %p51_p2 = scmp.eq.s32.totalorder %s1297_s25, 0  ;;  %s1759_s28 = smov (%p34_p0, %s33_s28), 0 }
  0x16   : > { %1716 = sst [smem:[#allocation22_spill]] %s1759_s28  ;;  %s1761_s29 = smov (!%p34_p0, %s36_s29), %s1293_s24 }
  0x17   : > { %p1408_p3 = por %p51_p2, %p1696_p1  ;;  %p1695_p4 = scmp.ne.s32.totalorder %s1273_s19, %s1269_s18 }
  0x18   : > { %p38_p5 = scmp.ge.s32.totalorder %s1761_s29, 2  ;;  %p1703_p6 = scmp.eq.s32.totalorder %s1391_s26, 0 }
  0x19   : > { %s1717_s5 = scalar_select %p1408_p3, 1, 0 }
  0x1a   : > { %s66_s6 = ssub.s32 %s1289_s23, %s1759_s28  ;;  %s69_s7 = sadd.s32 1, %s1265_s17 }
  0x1b   : > { %s1763_s29 = smov (%p38_p5, %s1761_s29), 0  ;;  %p1425_p7 = por %p1703_p6, %p1695_p4 }
  0x1c   : > { %1718 = sst [smem:[#allocation23_spill]] %s1763_s29  ;;  %p67_p8 = scmp.eq.s32.totalorder %s66_s6, 0 }
  0x1d   : > { %s1719_s8 = scalar_select %p1425_p7, 1, 0 }
  0x1e   : > { %s40_s9 = ssub.s32 %s1293_s24, %s1763_s29  ;;  %p76_p9 = scmp.ne.s32.totalorder %s1265_s17, %s1261_s16 }
  0x1f   : > { %p41_p10 = scmp.eq.s32.totalorder %s40_s9, 0  ;;  %p82_p11 = scmp.ne.s32.totalorder %s1261_s16, %s1257_s15 }
  0x20   : > { %s1436_s10 = scalar_select %p67_p8, %s1265_s17, %s69_s7  }
  0x21   : > { %s1439_s11 = scalar_select %p41_p10, %s1277_s20, %s43_s30  }
  0x22   : > { %1720 = sst [smem:[#allocation24_spill]] %s1436_s10  ;;  %p1443_p12 = por %p76_p9, %p51_p2 }
  0x23   : > { %1721 = sst [smem:[#allocation25_spill]] %s1439_s11  ;;  %p1449_p13 = por %p82_p11, %p1703_p6 }
  0x24   : > { %s1722_s12 = scalar_select %p1443_p12, 1, 0 }
  0x25   : > { %s1723_s13 = scalar_select %p1449_p13, 1, 0 }
  0x26   : > { %p153_p0 = scmp.eq.s32.totalorder %s1391_s26, 15  ;;  %p159_p5 = scmp.eq.s32.totalorder %s843_s27, 15 }
  0x27   : > { %p844_p4 = scmp.ge.s32.totalorder %s1297_s25, 1  ;;  %p166_p1 = scmp.lt.s32.totalorder %s1297_s25, 17 }
  0x28   : > { %p1724_p7 = scmp.ne.s32.totalorder %s1277_s20, %s1273_s19  ;;  %p1726_p8 = scmp.ne.s32.totalorder %s1273_s19, %s1269_s18 }
  0x29   : > { %p1470_p2 = pnand %p844_p4, %p166_p1  ;;  %s1299_s27 = smov [#allocation9]  }
  0x2a   : > { %p1459_p3 = por %p153_p0, %p1724_p7  ;;  %p1466_p10 = por %p159_p5, %p1726_p8 }
  0x2b   : > { %s1729_s30 = scalar_select %p1470_p2, 1, 0 }
  0x2c   : > { %s1725_s14 = scalar_select %p1459_p3, 1, 0 }
  0x2d   : > { %s1727_s15 = scalar_select %p1466_p10, 1, 0 }
  0x2e   : > { %p966_p9 = pneg %p1470_p2  ;;  %s179_s6 = sshll.u32 %s1299_s27, 4  ;;  %s180_s6 = int_to_ptr.vmem [resolvable:$true] %s179_s6 }
  0x2f   : > { %1728 = sst [smem:[#allocation26_spill]] %s1727_s15 }
  0x30   : > { %p1478_p7 = pnand %p966_p9, %p1703_p6  ;;  %s1731_s3 = sld [smem:[#allocation29_spill]] }
  0x32   : > { %p1085_p4 = pneg %p1478_p7 }
  0x36   : > { %s1083_s28 = scalar_lea.hbm %s1731_s3, 16 }
  0x37   : > { %p1084_p1 = scmp.ne.s32.totalorder %s1731_s3, %s1083_s28  ;;  %p1090_p5 = scmp.lt.u32.totalorder %s1083_s28, %s1731_s3 }
  0x39   : > { %p1086_p11 = pnand %p1085_p4, %p1084_p1 }
  0x3b   : > { %p1087_p0 = pneg %p1086_p11 }
  0x3d   : > { %p1092_p8 = pnand %p1090_p5, %p1087_p0 }
  0x3f   : > { %1095 = shalt.err (!%p1092_p8)
}
  0x40   : > { %s1096_s18 = scalar_lea.vmem %s180_s6, 16  ;;  %s1103_s29 = scalar_lea.vmem %s180_s6, 32 }
  0x41   : > { %p1097_p9 = scmp.ne.s32.totalorder %s180_s6, %s1096_s18  ;;  %p1104_p3 = scmp.lt.s32.totalorder %s180_s6, %s180_s6 }
  0x42   : > { %p1105_p13 = scmp.lt.s32.totalorder %s1103_s29, %s1096_s18 }
  0x43   : > { %p1099_p6 = pnand %p1097_p9, %p1085_p4 }
  0x44   : > { %p1106_p2 = por %p1105_p13, %p1104_p3 }
  0x45   : > { %p1100_p10 = pneg %p1099_p6 }
  0x47   : > { %p1107_p12 = pnand %p1106_p2, %p1100_p10 }
  0x49   : > { %1110 = shalt.err (!%p1107_p12)
}
  0x4a   : > { %969 = dma.hbm_to_vmem [thread:$0]  (!%p1478_p7), %s1731_s3, 16, %s180_s6, [#allocation10]  }
  0x4b   : > { %p846_p1 = scmp.ge.s32.totalorder %s1297_s25, 16 }
  0x4c   : > { %s190_s28 = sand.u32 (!%p846_p1), 1, %s1277_s20   ;;  %s848_s15 = sshll.u32 (!%p846_p1), %s1293_s24, 6 }
  0x4d   : > { %186 = sbr.rel (%p846_p1) target bundleno = 144 (0x90), region = 20  ;;  %s847_s9 = sshll.u32 (!%p846_p1), %s190_s28, 2 }
  0x4e   : > { %s1732_s0 = sld [smem:[#allocation27_spill]] (!%p846_p1)  ;;  %s194_s7 = scalar_lea.vmem (!%p846_p1), [#allocation3], %s847_s9 }
  0x4f   : > { %s201_s6 = sshll.u32 (!%p846_p1), %s194_s7, 4  ;;  %s191_s10 = scalar_lea.sflag (!%p846_p1), [#allocation4], %s190_s28  ;;  %s202_s6 = int_to_ptr.vmem [resolvable:$true] %s201_s6 }
  0x50   : > { %p1733_p6 = scmp.ne.s32.totalorder (!%p846_p1), %s1717_s5, 0 }
  0x54   : > { %s1504_s29 = scalar_lea.hbm %s1732_s0, %s848_s15  ;;  %s1115_s20 = scalar_lea.hbm %s1732_s0, 128 }
  0x55   : > { %s1111_s11 = scalar_lea.hbm %s1504_s29, 64  ;;  %p1116_p10 = scmp.lt.u32.totalorder %s1504_s29, %s1732_s0 }
  0x56   : > { %p1112_p3 = scmp.ne.s32.totalorder %s1504_s29, %s1111_s11  ;;  %p1117_p2 = scmp.lt.u32.totalorder %s1115_s20, %s1111_s11 }
  0x57   : > { %p1119_p4 = scmp.lt.u32.totalorder %s1111_s11, %s1504_s29 }
  0x58   : > { %p1113_p12 = pnand %p1112_p3, %p1733_p6  ;;  %p1118_p7 = por %p1117_p2, %p1116_p10 }
  0x5a   : > { %p1114_p13 = pneg %p1113_p12  ;;  %p1120_p11 = por %p1119_p4, %p1118_p7 }
  0x5c   : > { %p1121_p0 = pnand %p1120_p11, %p1114_p13 }
  0x5e   : > { %1124 = shalt.err (!%p1121_p0)
}
  0x5f   : > { %s1125_s28 = scalar_lea.vmem %s202_s6, 64  ;;  %s1300_s9 = smov [#allocation3]  }
  0x60   : > { %p1126_p5 = scmp.ne.s32.totalorder %s202_s6, %s1125_s28  ;;  %s1129_s18 = sshll.u32 %s1300_s9, 4  ;;  %s1130_s18 = int_to_ptr.vmem [resolvable:$false] %s1129_s18 }
  0x61   : > { %s1131_s3 = scalar_lea.vmem %s1130_s18, 128  ;;  %p1132_p1 = scmp.lt.s32.totalorder %s202_s6, %s1130_s18 }
  0x62   : > { %p1127_p8 = pnand %p1126_p5, %p1733_p6  ;;  %p1133_p3 = scmp.lt.s32.totalorder %s1131_s3, %s1125_s28 }
  0x64   : > { %p1128_p9 = pneg %p1127_p8  ;;  %p1134_p12 = por %p1133_p3, %p1132_p1 }
  0x66   : > { %p1135_p2 = pnand %p1134_p12, %p1128_p9 }
  0x68   : > { %1138 = shalt.err (!%p1135_p2)
}
  0x69   : > { %949 = dma.hbm_to_vmem [thread:$0]  (%p1733_p6), %s1504_s29, 64, %s202_s6, %s191_s10  }
  0x6a   : > { %s208_s20 = sand.u32 1, %s1297_s25   ;;  %s210_s24 = sand.u32 1, %s1265_s17  }
  0x6b   : > { %s945_s7 = smul.u32 48, %s210_s24  ;;  %p1734_p13 = scmp.ne.s32.totalorder %s1722_s12, 0 }
  0x6c   : > { %s887_s27 = sshll.u32 %s1289_s23, 8  ;;  %s1301_s15 = smov 2048  }
  0x6d   : > { %s950_s11 = scalar_select %p1734_p13, [#allocation0], [#allocation14] }
  0x6e   : > { %951 = sst [smem:[#allocation13]] (%p1734_p13), %s1301_s15  ;;  %s212_s29 = scalar_lea.vmem [#allocation6], %s945_s7 }
  0x6f   : > { %s223_s5 = sld [smem:[%s950_s11]]   ;;  %s231_s6 = sshll.u32 %s212_s29, 4  ;;  %s232_s6 = int_to_ptr.vmem [resolvable:$true] %s231_s6 }
  0x70   : > { %s1302_s10 = smov 256   ;;  %s1735_s1 = sld [smem:[#allocation28_spill]] }
  0x71   : > { %952 = sst [smem:[#allocation13 + $0x1]] (%p1734_p13), %s1302_s10  ;;  %s1303_s3 = smov 4  }
  0x72   : > { %953 = sst [smem:[#allocation13 + $0x2]] (%p1734_p13), %s1303_s3  ;;  %s1304_s0 = smov 64  }
  0x73   : > { %954 = sst [smem:[#allocation13 + $0x3]] (%p1734_p13), %s1304_s0  ;;  %s1543_s15 = scalar_lea.sflag [#allocation7], %s208_s20 }
  0x74   : > { %955 = sst [smem:[#allocation13 + $0x4]] (%p1734_p13), %s1304_s0  ;;  %s1305_s29 = smov [#allocation12]  }
  0x75   : > { %s851_s11 = sshll.u32 %s223_s5, 26  ;;  %956 = sst [smem:[#allocation13 + $0x5]] (%p1734_p13), %s1303_s3 }
  0x76   : > { %s218_s18 = scalar_lea.hbm %s1735_s1, %s887_s27  ;;  %s852_s7 = sadd.s32 134217728, %s851_s11 }
  0x77   : > { %957 = dma.general (%p1734_p13), %s218_s18, 768, %s232_s6, %s1543_s15, %s1305_s29, [#allocation13], %s852_s7, 0  }
  0x78   : > { %s853_s27 = sshll.u32 %s210_s24, 1  ;;  %s854_s10 = sshll.u32 %s1289_s23, 5 }
  0x79   : > { %s1552_s1 = scalar_lea.hbm %s1692_s2, %s854_s10  ;;  %s258_s0 = scalar_lea.vmem [#allocation8], %s853_s27 }
  0x7a   : > { %s265_s20 = sshll.u32 %s258_s0, 4  ;;  %s1139_s5 = scalar_lea.hbm %s1552_s1, 32  ;;  %s266_s20 = int_to_ptr.vmem [resolvable:$true] %s265_s20 }
  0x7b   : > { %p1140_p6 = scmp.ne.s32.totalorder %s1552_s1, %s1139_s5  ;;  %s1143_s18 = scalar_lea.hbm %s1692_s2, 256 }
  0x7c   : > { %p1144_p4 = scmp.lt.u32.totalorder %s1552_s1, %s1692_s2  ;;  %p1145_p11 = scmp.lt.u32.totalorder %s1143_s18, %s1139_s5 }
  0x7d   : > { %p1141_p10 = pnand %p1140_p6, %p1734_p13  ;;  %p1147_p5 = scmp.lt.u32.totalorder %s1139_s5, %s1552_s1 }
  0x7e   : > { %p1146_p0 = por %p1145_p11, %p1144_p4 }
  0x7f   : > { %p1142_p7 = pneg %p1141_p10 }
  0x80   : > { %p1148_p8 = por %p1147_p5, %p1146_p0 }
  0x82   : > { %p1149_p9 = pnand %p1148_p8, %p1142_p7 }
  0x84   : > { %1152 = shalt.err (!%p1149_p9)
}
  0x85   : > { %s1153_s7 = scalar_lea.vmem %s266_s20, 32  ;;  %s1306_s29 = smov [#allocation8]  }
  0x86   : > { %p1154_p1 = scmp.ne.s32.totalorder %s266_s20, %s1153_s7  ;;  %s1157_s27 = sshll.u32 %s1306_s29, 4  ;;  %s1158_s27 = int_to_ptr.vmem [resolvable:$false] %s1157_s27 }
  0x87   : > { %s1159_s10 = scalar_lea.vmem %s1158_s27, 64  ;;  %p1160_p2 = scmp.lt.s32.totalorder %s266_s20, %s1158_s27 }
  0x88   : > { %p1155_p3 = pnand %p1154_p1, %p1734_p13  ;;  %p1161_p6 = scmp.lt.s32.totalorder %s1159_s10, %s1153_s7 }
  0x8a   : > { %p1156_p12 = pneg %p1155_p3  ;;  %p1162_p10 = por %p1161_p6, %p1160_p2 }
  0x8c   : > { %p1163_p4 = pnand %p1162_p10, %p1156_p12 }
  0x8e   : > { %1166 = shalt.err (!%p1163_p4)
}
  0x8f   : > { %958 = dma.hbm_to_vmem [thread:$0]  (%p1734_p13), %s1552_s1, 32, %s266_s20, %s1543_s15  }
  0x90 PF: > { %p1736_p7 = scmp.ne.s32.totalorder %s1729_s30, 0 }
  0x91   : > { %s1575_s28 = sand.u32 (!%p1736_p7), 1, %s1273_s19   ;;  %p1737_p11 = scmp.ne.s32.totalorder (!%p1736_p7), %s1719_s8, 0 }
  0x92   : > { %274 = sbr.rel (%p1736_p7) target bundleno = 1388 (0x56c), region = 36  ;;  %s856_s9 = sshll.u32 (!%p1736_p7), %s1575_s28, 2 }
  0x93   : > { %s277_s0 = scalar_lea.sflag (!%p1736_p7), [#allocation4], %s1575_s28  ;;  %s280_s5 = scalar_lea.vmem (!%p1736_p7), [#allocation3], %s856_s9 }
  0x99   : > { %1240 = dma.done.wait (%p1737_p11), %s277_s0, 64  }
  0x9a   : > { %1242 = vsyncadd (%p1737_p11), %s277_s0, 4294967232  ;;  %s285_s1 = sand.u32 1, %s1391_s26   ;;  %s287_s12 = sand.u32 1, %s1261_s16  }
  0x9b   : > { %s946_s30 = smul.u32 48, %s287_s12  ;;  %s286_s15 = scalar_lea.sflag [#allocation7], %s285_s1 }
  0x9c   : > { %p1738_p13 = scmp.ne.s32.totalorder %s1723_s13, 0 }
  0x9d   : > { %s1585_s20 = scalar_lea.vmem [#allocation6], %s946_s30 }
  0x9e   : > { %1244 = dma.done.wait (%p1738_p13), %s286_s15, 800  }
  0x9f   : > { %1246 = vsyncadd (%p1738_p13), %s286_s15, 4294966496  ;;  %s1591_s24 = sshll.u32 %s287_s12, 1  ;;  %p1739_p0 = scmp.eq.s32.totalorder %s1391_s26, 0 }
  0xa0   : > { %s298_s8 = scalar_lea.vmem [#allocation8], %s1591_s24 }
  0xa1   : > { %1248 = dma.done.wait (%p1739_p0), [#allocation10], 16   ;;  %p1740_p5 = pmov %p1739_p0 }
  0xa2   : > { %s859_s6 = sshll.u32 %s1575_s28, 3  ;;  %v1307_v0 = vmov 0.0   ;;  %vm1308_vm0 = vmmov 0   ;;  %v1073_v1 = vld [vmem:[%s1585_s20 + $0x10] sm:$0xff]   ;;  %v1074_v2 = vld [vmem:[%s1585_s20] sm:$0xff]   ;;  %v1075_v3 = vld [vmem:[%s1585_s20 + $0x18] sm:$0xff]  }
  0xa3   : > { %1250 = vsyncadd (%p1740_p5), [#allocation10], 4294967280  ;;  %911 = vmatprep.subr.bf16.mxu1 %v1307_v0  ;;  %903 = vmatprep.subr.bf16.mxu0 %v1307_v0  ;;  %v1076_v4 = vld [vmem:[%s1585_s20 + $0x8] sm:$0xff]   ;;  %vm365_vm1 = vcmask 261120   ;;  %vm516_vm2 = vcmask 31744   ;;  %v1077_v18 = vld [vmem:[%s1585_s20 + $0x20] sm:$0xff]  }
  0xa4   : > { %915 = vmatprep.mubr.msk.bf16.mxu1 %vm1308_vm0, %v1307_v0  ;;  %907 = vmatprep.mubr.msk.bf16.mxu0 %vm1308_vm0, %v1307_v0  ;;  %v338_v5 = vld [vmem:[%s280_s5] sm:$0xf]  ;;  %vm563_vm3 = vcmask 64512   ;;  %vm580_vm4 = vcmask 1043456   ;;  %v625_v36 = vld [vmem:[%s298_s8] sm:$0x3] }
  0xa5   : > { %912 = vmatpush3.bf16.msra.mxu1 %v1073_v1  ;;  %904 = vmatpush3.bf16.msra.mxu0 %v1074_v2  ;;  %v1078_v19 = vld [vmem:[%s1585_s20 + $0x28] sm:$0xff]   ;;  %vm629_vm5 = vcmask 1041408   ;;  %s336_s26 = scalar_lea.vmem [#allocation11], %s859_s6  ;;  %p880_p8 = scmp.ne.s32.totalorder %s1281_s21, 0 }
  0xa6   : > { %913 = vmatprep.subr.bf16.mxu1 %v1307_v0  ;;  %905 = vmatprep.subr.bf16.mxu0 %v1307_v0  ;;  %v631_v37 = vsel %vm629_vm5, %v625_v36, 0  ;;  %v881_v51 = vld [vmem:[#allocation9] ss:$0 sm:$0xff] (!%p880_p8) }
  0xa7   : > { %684 = vst.msk [vmem:[#allocation2] sm:$0xff] (!%p880_p8), %vm365_vm1, %v881_v51 }
  0xa9   : > { %914 = vmatpush3.bf16.msra.mxu1 %v1075_v3  ;;  %906 = vmatpush3.bf16.msra.mxu0 %v1076_v4 }
  0xaa   : > { %927 = vmatprep.subr.bf16.mxu1 %v1307_v0  ;;  %919 = vmatprep.subr.bf16.mxu0 %v1307_v0 }
  0xac   : > { %916 = vmatmul.mubr.msk.bf16.vlgmr.msra.gmra.mrb[0].mxu1 %vm365_vm1, %v338_v5  ;;  %908 = vmatmul.mubr.msk.bf16.vlgmr.msra.gmra.mrb[0].mxu0 %vm365_vm1, %v338_v5 }
  0xad   : > { %929 = vmatprep.mubr.msk.bf16.mxu1 %vm1308_vm0, %v1307_v0  ;;  %923 = vmatprep.mubr.msk.bf16.mxu0 %vm1308_vm0, %v1307_v0 }
  0xae   : > { %920 = vmatpush3.bf16.msra.mxu0 %v1077_v18 }
  0xaf   : > { %921 = vmatprep.subr.bf16.mxu0 %v1307_v0 }
  0xb2   : > { %922 = vmatpush3.bf16.msra.mxu0 %v1078_v19 }
  0xb3   : > { %933 = vmatprep.subr.bf16.mxu0 %v1307_v0 }
  0xb5   : > { %924 = vmatmul.mubr.msk.bf16.vlgmr.msra.gmra.mrb[4].mxu0 %vm365_vm1, %v338_v5 }
  0xb6   : > { %935 = vmatprep.mubr.msk.bf16.mxu0 %vm1308_vm0, %v1307_v0 }
 0x17f   : > { %v456_v6 = vpop.f32.mrb[0].mxu1  ;;  %v403_v9 = vpop.f32.mrb[0].mxu0 }
 0x180   : > { %v515_v7 = vpack.c.bf16 %v456_v6, %v456_v6  ;;  %v917_v8 = vpop.f32.mrb[1].mxu1  ;;  %v909_v11 = vpop.f32.mrb[1].mxu0  ;;  %v409_v14 = vmul.f32 0.5, %v403_v9 }
 0x181   : > { %v459_v10 = vpop.f32.mrb[2].mxu1  ;;  %v406_v15 = vpop.f32.mrb[2].mxu0 }
 0x182   : > { %v521_v12 = vsel %vm516_vm2, %v515_v7, 0  ;;  %v918_v13 = vpop.f32.mrb[3].mxu1  ;;  %v910_v16 = vpop.f32.mrb[3].mxu0  ;;  %v514_v17 = vpack.c.bf16 %v409_v14, %v409_v14 }
 0x183   : > { %928 = vmatpush3.bf16.xpose.msra.mxu1 %v521_v12 }
 0x184   : > { %939 = vmatprep.subr.bf16.mxu1 %v1307_v0 }
 0x188   : > { %v508_v30 = vpop.f32.mrb[4].mxu0 }
 0x189   : > { %v925_v31 = vpop.f32.mrb[5].mxu0  ;;  %v576_v34 = vpack.c.bf16 %v508_v30, %v508_v30 }
 0x18a   : > { %930 = vmatmul.mubr.msk.bf16.vlgmr.msra.gmra.mrb[4].mxu1 %vm516_vm2, %v514_v17  ;;  %v511_v32 = vpop.f32.mrb[6].mxu0 }
 0x18b   : > { %941 = vmatprep.mubr.msk.bf16.mxu1 %vm1308_vm0, %v1307_v0  ;;  %v926_v33 = vpop.f32.mrb[7].mxu0  ;;  %v582_v35 = vsel %vm580_vm4, %v576_v34, 0  ;;  %940 = vmatpush3.bf16.msra.mxu1 %v631_v37 }
 0x18c   : > { %934 = vmatpush3.bf16.msra.mxu0 %v582_v35 }
 0x25d   : > { %v557_v20 = vpop.f32.mrb[4].mxu1 }
 0x25e   : > { %v931_v21 = vpop.f32.mrb[5].mxu1  ;;  %v564_v22 = vsel %vm563_vm3, %v557_v20, -inf }
 0x25f   : > { %565 = vmax.xlane.f32.xlu0 %v564_v22  ;;  %v560_v23 = vpop.f32.mrb[6].mxu1 }
 0x260   : > { %v932_v24 = vpop.f32.mrb[7].mxu1 }
 0x2ec   : > { %v566_v25 = vpop.xlane.xlu0 %565 }
 0x2ed   : > { %v567_v26 = vsub.f32 %v557_v20, %v566_v25 }
 0x2ef   : > { %v568_v27 = vmul.f32 1.442695, %v567_v26 }
 0x2f1   : > { %1079 = vpow2.f32 %v568_v27 }
 0x2fb   : > { %v1080_v28 = vpop.eup %1079 }
 0x2fc   : > { %v570_v29 = vsel %vm563_vm3, %v1080_v28, 0.0 }
 0x2fd   : > { %571 = vadd.xlane.f32.xlu0 %v570_v29 }
 0x38a   : > { %v572_v38 = vpop.xlane.xlu0 %571 }
 0x38b   : > { %1081 = vrcp.f32 %v572_v38 }
 0x395   : > { %v1082_v39 = vpop.eup %1081 }
 0x396   : > { %v574_v40 = vmul.f32 %v1082_v39, %v1080_v28 }
 0x398   : > { %v575_v41 = vpack.c.bf16 %v574_v40, %v574_v40 }
 0x39a   : > { %936 = vmatmul.mubr.msk.bf16.vlgmr.msra.gmra.mrb[8].mxu0 %vm563_vm3, %v575_v41 }
 0x46d   : > { %v618_v42 = vpop.f32.mrb[8].mxu0 }
 0x46e   : > { %v624_v43 = vpack.c.bf16 %v618_v42, %v618_v42  ;;  %v937_v44 = vpop.f32.mrb[9].mxu0 }
 0x46f   : > { %v621_v45 = vpop.f32.mrb[10].mxu0 }
 0x470   : > { %v938_v46 = vpop.f32.mrb[11].mxu0  ;;  %942 = vmatmul.mubr.msk.bf16.vlgmr.msra.gmra.mrb[8].mxu1 %vm516_vm2, %v624_v43 }
 0x540   : > { %676 = sbr.rel (%p880_p8) target bundleno = 1351 (0x547), region = 56 }
 0x543   : > { %v667_v47 = vpop.f32.mrb[8].mxu1 }
 0x544   : > { %v943_v48 = vpop.f32.mrb[9].mxu1 }
 0x545   : > { %v670_v49 = vpop.f32.mrb[10].mxu1 }
 0x546   : > { %v944_v50 = vpop.f32.mrb[11].mxu1 }
 0x547 PF: > { %v685_v52 = vld [vmem:[#allocation2] sm:$0xff]  ;;  %p882_p9 = scmp.ne.s32.totalorder %s1281_s21, 7 }
 0x548   : > { %v686_v53 = vadd.f32 %v685_v52, %v667_v47 }
 0x549   : > { %691 = sbr.rel (%p882_p9) target bundleno = 1363 (0x553), region = 60 }
 0x54a   : > { %687 = vst.msk [vmem:[#allocation2] sm:$0xff] %vm365_vm1, %v686_v53 }
 0x551   : > { %v692_v54 = vld [vmem:[#allocation2] sm:$0xff] }
 0x552   : > { %693 = vst.msk [vmem:[%s336_s26] sm:$0xff] %vm365_vm1, %v692_v54 }
 0x553 PF: > { %s884_s13 = sshll.u32 %s1285_s22, 7  ;;  %s708_s7 = sshll.u32 %s336_s26, 4  ;;  %s709_s7 = int_to_ptr.vmem [resolvable:$true] %s708_s7 }
 0x554   : > { %s1633_s11 = scalar_lea.hbm %s1694_s4, %s884_s13  ;;  %s695_s29 = scalar_lea.sflag [#allocation5], %s1575_s28 }
 0x555   : > { %s1167_s27 = scalar_lea.vmem %s709_s7, 128  ;;  %p1741_p3 = scmp.ne.s32.totalorder %s1725_s14, 0 }
 0x556   : > { %p1168_p1 = scmp.ne.s32.totalorder %s709_s7, %s1167_s27  ;;  %s1309_s21 = smov [#allocation11]  }
 0x557   : > { %s1171_s10 = sshll.u32 %s1309_s21, 4  ;;  %s1172_s10 = int_to_ptr.vmem [resolvable:$false] %s1171_s10 }
 0x558   : > { %p1169_p12 = pnand %p1168_p1, %p1741_p3  ;;  %s1173_s9 = scalar_lea.vmem %s1172_s10, 256 }
 0x559   : > { %p1174_p6 = scmp.lt.s32.totalorder %s709_s7, %s1172_s10  ;;  %p1175_p10 = scmp.lt.s32.totalorder %s1173_s9, %s1167_s27 }
 0x55a   : > { %p1170_p2 = pneg %p1169_p12 }
 0x55b   : > { %p1176_p4 = por %p1175_p10, %p1174_p6 }
 0x55d   : > { %p1177_p7 = pnand %p1176_p4, %p1170_p2 }
 0x55f   : > { %1180 = shalt.err (!%p1177_p7)
}
 0x560   : > { %s1181_s22 = scalar_lea.hbm %s1633_s11, 128  ;;  %s1185_s5 = scalar_lea.hbm %s1694_s4, 256 }
 0x561   : > { %p1182_p11 = scmp.ne.s32.totalorder %s1633_s11, %s1181_s22  ;;  %p1186_p5 = scmp.lt.u32.totalorder %s1633_s11, %s1694_s4 }
 0x562   : > { %p1187_p8 = scmp.lt.u32.totalorder %s1185_s5, %s1181_s22  ;;  %p1189_p1 = scmp.lt.u32.totalorder %s1181_s22, %s1633_s11 }
 0x563   : > { %p1183_p13 = pnand %p1182_p11, %p1741_p3 }
 0x564   : > { %p1188_p9 = por %p1187_p8, %p1186_p5 }
 0x565   : > { %p1184_p0 = pneg %p1183_p13 }
 0x566   : > { %p1190_p12 = por %p1189_p1, %p1188_p9 }
 0x568   : > { %p1191_p2 = pnand %p1190_p12, %p1184_p0 }
 0x56a   : > { %1194 = shalt.err (!%p1191_p2)
}
 0x56b   : > { %964 = dma.vmem_to_hbm [thread:$0]  (%p1741_p3), %s709_s7, 128, %s1633_s11, %s695_s29  }
 0x56c PF: > { %s1742_s30 = sld [smem:[#allocation19_spill]]  ;;  %s1743_s15 = sld [smem:[#allocation26_spill]] }
 0x56d   : > { %p976_p6 = scmp.ge.s32.totalorder %s1297_s25, 2 }
 0x572   : > { %s720_s20 = sand.u32 1, %s1742_s30   ;;  %p1744_p10 = scmp.ne.s32.totalorder %s1743_s15, 0 }
 0x573   : > { %s721_s24 = scalar_lea.sflag [#allocation5], %s720_s20 }
 0x574   : > { %p971_p4 = pnand %p976_p6, %p1744_p10 }
 0x576   : > { %1252 = dma.done.wait (!%p971_p4), %s721_s24, 128  }
 0x577   : > { %1254 = vsyncadd (!%p971_p4), %s721_s24, 4294967168  ;;  %s24_s25 = sadd.s32 1, %s1297_s25   ;;  %s1745_s8 = sld [smem:[#allocation24_spill]] }
 0x578   : > { %p21_p7 = scmp.ge.s32.totalorder %s24_s25, 18   ;;  %s1746_s14 = sld [smem:[#allocation20_spill]] }
 0x579   : > { %s1747_s20 = sld [smem:[#allocation25_spill]]  ;;  %s1748_s22 = sld [smem:[#allocation21_spill]] }
 0x57a   : > { %s1749_s6 = sld [smem:[#allocation22_spill]]  ;;  %s1750_s24 = sld [smem:[#allocation23_spill]] }
 0x57b   : > { %s1751_s15 = smov %s1261_s16  ;;  %s1752_s16 = smov %s1265_s17 }
 0x57c   : > { %s1754_s18 = smov %s1273_s19  ;;  %s1756_s21 = smov %s1289_s23 }
 0x57d   : > { %s1753_s17 = smov %s1745_s8  ;;  %23 = sbr.rel (!%p21_p7) target bundleno = 16 (0x10), region = 124 }
 0x57e   : > { %s1755_s19 = smov %s1746_s14 }
 0x580   : > { %s1757_s23 = smov %s1749_s6 }
 0x584   :  { %726 = vsyncpa [#allocation4], 1 }
 0x585   :  { %728 = vsyncpa [#allocation4 + $0x1], 1 }
 0x586   :  { %729 = vsyncpa [#allocation7], 1 }
 0x587   :  { %731 = vsyncpa [#allocation7 + $0x1], 1 }
 0x588   :  { %732 = vsyncpa [#allocation10], 1 }
 0x589   :  { %733 = vsyncpa [#allocation5], 1 }
 0x58a   :  { %735 = vsyncpa [#allocation5 + $0x1], 1 }

</bundles_post_ra>
